<compile_context>
chip_gen: v7x
topology: tpu7x:2x2x1
jax: 0.10.0
libtpu: 0.0.40
codegen_flags: <defaults>
</compile_context>

<pallas_src>
import functools

import jax
import jax.numpy as jnp
from jax.experimental import pallas as pl
from jax.experimental.pallas import tpu as pltpu

_LANE = 128  # lane width of the output slab (full vreg lane extent)


def _round_up(x, m):
    return ((x + m - 1) // m) * m


def _dssm_kernel(q_ref, s_ref, w0_ref, b0_ref, w1_ref, b1_ref, o_ref, *, tile_b):
    """Fused DSSM forward for one batch tile.

    q_ref/s_ref : (TILE_B, V)    bf16 (or f32)
    w0_ref      : (V, H1)        bf16 -- resident across the grid
    b0_ref      : (1, H1)        f32
    w1_ref      : (H1, H2)       bf16 -- resident across the grid
    b1_ref      : (1, H2)        f32
    o_ref       : (TILE_B, 128)  f32  -- score broadcast across lanes
    """
    # Stack query & sentence rows: one MXU pass per layer covers both towers.
    x = jnp.concatenate([q_ref[...], s_ref[...]], axis=0)            # (2T, V)

    # linear0 + bias + ReLU   (Dropout(0.5) is identity in eval mode)
    h = jnp.dot(x, w0_ref[...], preferred_element_type=jnp.float32)  # f32 acc
    h = jnp.maximum(h + b0_ref[...], 0.0)

    # linear1 + bias + ReLU
    h = jnp.dot(h.astype(w1_ref.dtype), w1_ref[...],
                preferred_element_type=jnp.float32)
    h = jnp.maximum(h + b1_ref[...], 0.0)                            # (2T, H2)

    q = h[:tile_b, :]
    s = h[tile_b:, :]

    # cosine(q, s) = (q . s) / ((|q| + eps) * (|s| + eps))
    # == (q/(|q|+eps)) . (s/(|s|+eps)) without the two full-tensor divisions.
    qq = jnp.sum(q * q, axis=-1, keepdims=True)                      # (T, 1)
    ss = jnp.sum(s * s, axis=-1, keepdims=True)
    qs = jnp.sum(q * s, axis=-1, keepdims=True)
    denom = (jnp.sqrt(qq) + 1e-7) * (jnp.sqrt(ss) + 1e-7)
    score = jax.nn.sigmoid(qs / denom)                               # (T, 1)

    # Lane-dense writeback: broadcast each row's score across 128 lanes so the
    # store is an unmasked full-width vst (wrapper keeps only column 0).
    o_ref[...] = jnp.broadcast_to(score, o_ref.shape)


def dssm_forward(sentence, query, query_idf=None, w0=None, b0=None, w1=None,
                 b1=None, *, tile_b=128, param_dtype=jnp.bfloat16):
    """DSSM_class.forward (eval mode).

    sentence/query: [B, V]; w0: [V, H1]; b0: [H1]/[1,H1]; w1: [H1, H2];
    b1: [H2]/[1,H2]. `query_idf` is unused by the original forward.
    Returns sigmoid(cosine(MLP(query), MLP(sentence))) as [B, 1] float32.

    tile_b: batch tile (multiple of 8; use 256/512 at production batch sizes).
    """
    del query_idf  # present in the PyTorch signature but never used
    B, V = query.shape
    H1 = w0.shape[1]
    H2 = w1.shape[1]

    # Shrink the tile for small batches; keep it sublane-aligned (multiple of 8).
    tile_b = int(min(max(8, _round_up(tile_b, 8)), _round_up(B, 8)))

    # Parameter layout: weights as [in, out] (x @ W), biases as [1, out] f32.
    b0 = jnp.asarray(b0, jnp.float32).reshape(1, H1)
    b1 = jnp.asarray(b1, jnp.float32).reshape(1, H2)

    # bf16 HBM traffic for the big operands; f32 accumulation in the kernel.
    q = query.astype(param_dtype)
    s = sentence.astype(param_dtype)
    w0 = w0.astype(param_dtype)
    w1 = w1.astype(param_dtype)

    # Pad batch to a multiple of the tile (padded rows are discarded).
    n_tiles = pl.cdiv(B, tile_b)
    b_pad = n_tiles * tile_b
    if b_pad != B:
        pad = ((0, b_pad - B), (0, 0))
        q = jnp.pad(q, pad)
        s = jnp.pad(s, pad)

    # VMEM budget: double-buffered q/s tiles + resident params + output slab
    # + f32 intermediates, with 2x headroom (clamped under v7x's 64 MiB VMEM).
    itemsize = jnp.dtype(param_dtype).itemsize
    vmem_bytes = (2 * 2 * tile_b * V * itemsize        # q, s (double-buffered)
                  + (V * H1 + H1 * H2) * itemsize      # resident weights
                  + 4 * (H1 + H2)                      # biases (f32)
                  + 2 * tile_b * _LANE * 4             # output (double-buffered)
                  + 4 * 2 * tile_b * max(H1, H2) * 4)  # f32 intermediates
    vmem_limit = int(min(max(2 * vmem_bytes, 8 << 20), 48 << 20))

    kernel = functools.partial(_dssm_kernel, tile_b=tile_b)

    out = pl.pallas_call(
        kernel,
        out_shape=jax.ShapeDtypeStruct((b_pad, _LANE), jnp.float32),
        grid=(n_tiles,),
        in_specs=[
            pl.BlockSpec((tile_b, V), lambda i: (i, 0)),   # query tile
            pl.BlockSpec((tile_b, V), lambda i: (i, 0)),   # sentence tile
            pl.BlockSpec((V, H1), lambda i: (0, 0)),       # w0 (resident)
            pl.BlockSpec((1, H1), lambda i: (0, 0)),       # b0 (resident)
            pl.BlockSpec((H1, H2), lambda i: (0, 0)),      # w1 (resident)
            pl.BlockSpec((1, H2), lambda i: (0, 0)),       # b1 (resident)
        ],
        out_specs=pl.BlockSpec((tile_b, _LANE), lambda i: (i, 0)),
        compiler_params=pltpu.CompilerParams(
            dimension_semantics=("parallel",),   # shard batch tiles across TCs
            vmem_limit_bytes=vmem_limit,
        ),
    )(q, s, w0, b0, w1, b1)

    return out[:B, :1]


# ----------------------------- references -----------------------------------


def dssm_reference_f32(sentence, query, w0, b0, w1, b1):
    """Pure-f32 reference mirroring the PyTorch forward (eval mode)."""
    b0 = b0.reshape(1, -1)
    b1 = b1.reshape(1, -1)

    def mlp(x):
        h = jnp.maximum(x @ w0 + b0, 0.0)
        h = jnp.maximum(h @ w1 + b1, 0.0)
        return h

    qf = mlp(query.astype(jnp.float32))
    sf = mlp(sentence.astype(jnp.float32))
    qn = jnp.linalg.norm(qf, axis=-1, keepdims=True) + 1e-7
    sn = jnp.linalg.norm(sf, axis=-1, keepdims=True) + 1e-7
    cos = jnp.sum((qf / qn) * (sf / sn), axis=-1, keepdims=True)
    return jax.nn.sigmoid(cos)


def dssm_reference_mirrored(sentence, query, w0, b0, w1, b1,
                            param_dtype=jnp.bfloat16):
    """Reference mirroring the kernel's bf16-traffic / f32-accumulate math."""
    b0 = b0.reshape(1, -1).astype(jnp.float32)
    b1 = b1.reshape(1, -1).astype(jnp.float32)
    w0c = w0.astype(param_dtype)
    w1c = w1.astype(param_dtype)

    def mlp(x):
        h = jnp.dot(x.astype(param_dtype), w0c,
                    preferred_element_type=jnp.float32)
        h = jnp.maximum(h + b0, 0.0)
        h = jnp.dot(h.astype(param_dtype), w1c,
                    preferred_element_type=jnp.float32)
        h = jnp.maximum(h + b1, 0.0)
        return h

    qf = mlp(query)
    sf = mlp(sentence)
    qq = jnp.sum(qf * qf, axis=-1, keepdims=True)
    ss = jnp.sum(sf * sf, axis=-1, keepdims=True)
    qs = jnp.sum(qf * sf, axis=-1, keepdims=True)
    denom = (jnp.sqrt(qq) + 1e-7) * (jnp.sqrt(ss) + 1e-7)
    return jax.nn.sigmoid(qs / denom)


if __name__ == "__main__":
    # Small synthetic configuration: nvocab = 32, nhiddens = "64 32"
    #   -> MLP: 32 -> 64 -> 32
    B, NVOCAB, H1, H2 = 8, 32, 64, 32

    key = jax.random.PRNGKey(0)
    k_q, k_s, k_i, k_w0, k_b0, k_w1, k_b1 = jax.random.split(key, 7)

    query = jax.random.uniform(k_q, (B, NVOCAB), dtype=jnp.float32)
    sentence = jax.random.uniform(k_s, (B, NVOCAB), dtype=jnp.float32)
    query_idf = jax.random.uniform(k_i, (B, NVOCAB), dtype=jnp.float32)  # unused

    def linear_init(kw, kb, fan_in, fan_out):
        bound = 1.0 / (fan_in ** 0.5)
        w = jax.random.uniform(kw, (fan_in, fan_out), jnp.float32, -bound, bound)
        b = jax.random.uniform(kb, (1, fan_out), jnp.float32, -bound, bound)
        return w, b

    w0, b0 = linear_init(k_w0, k_b0, NVOCAB, H1)
    w1, b1 = linear_init(k_w1, k_b1, H1, H2)

    score = dssm_forward(sentence, query, query_idf, w0, b0, w1, b1)
    score = jax.block_until_ready(score)
    assert score.shape == (B, 1), score.shape

    ref_mirror = dssm_reference_mirrored(sentence, query, w0, b0, w1, b1)
    ref_f32 = dssm_reference_f32(sentence, query, w0, b0, w1, b1)

    assert jnp.allclose(score, ref_mirror, atol=2e-3, rtol=2e-3), (score, ref_mirror)
    assert jnp.allclose(score, ref_f32, atol=3e-2, rtol=3e-2), (score, ref_f32)

    print("KERNEL_OK")
</pallas_src>

<mosaic_0001>
module attributes {stable_mosaic.version = 11 : i64} {
  func.func @_dssm_kernel(%arg0: i32, %arg1: memref<8x32xbf16, #tpu.memory_space<vmem>>, %arg2: memref<8x32xbf16, #tpu.memory_space<vmem>>, %arg3: memref<32x64xbf16, #tpu.memory_space<vmem>>, %arg4: memref<1x64xf32, #tpu.memory_space<vmem>>, %arg5: memref<64x32xbf16, #tpu.memory_space<vmem>>, %arg6: memref<1x32xf32, #tpu.memory_space<vmem>>, %arg7: memref<8x128xf32, #tpu.memory_space<vmem>>) attributes {dimension_semantics = [#tpu.dimension_semantics<parallel>], iteration_bounds = array<i64: 1>, scalar_prefetch = 0 : i64, scratch_operands = 0 : i64, tpu.core_type = #tpu.core_type<tc>, window_params = [{transform_indices = @transform_0, window_bounds = array<i64: 8, 32>}, {transform_indices = @transform_1, window_bounds = array<i64: 8, 32>}, {pipeline_mode = #tpu.pipeline_mode<synchronous>, transform_indices = @transform_2, window_bounds = array<i64: 32, 64>}, {pipeline_mode = #tpu.pipeline_mode<synchronous>, transform_indices = @transform_3, window_bounds = array<i64: 1, 64>}, {pipeline_mode = #tpu.pipeline_mode<synchronous>, transform_indices = @transform_4, window_bounds = array<i64: 64, 32>}, {pipeline_mode = #tpu.pipeline_mode<synchronous>, transform_indices = @transform_5, window_bounds = array<i64: 1, 32>}, {transform_indices = @transform_6, window_bounds = array<i64: 8, 128>}]} {
    %c0 = arith.constant 0 : index
    %c0_0 = arith.constant 0 : index
    %0 = vector.load %arg1[%c0, %c0_0] : memref<8x32xbf16, #tpu.memory_space<vmem>>, vector<8x32xbf16>
    %c0_1 = arith.constant 0 : index
    %c0_2 = arith.constant 0 : index
    %1 = vector.load %arg2[%c0_1, %c0_2] : memref<8x32xbf16, #tpu.memory_space<vmem>>, vector<8x32xbf16>
    %2 = tpu.concatenate %0, %1 in 0 : vector<8x32xbf16>, vector<8x32xbf16> -> vector<16x32xbf16>
    %c0_3 = arith.constant 0 : index
    %c0_4 = arith.constant 0 : index
    %3 = vector.load %arg3[%c0_3, %c0_4] : memref<32x64xbf16, #tpu.memory_space<vmem>>, vector<32x64xbf16>
    %cst = arith.constant dense<0.000000e+00> : vector<16x64xf32>
    %4 = tpu.matmul %2, %3, %cst {dimension_numbers = #tpu.dot_dimension_numbers<[1], [0], [0], [1], [0, 0, 1, 1], [], []>} : vector<16x32xbf16>, vector<32x64xbf16>, vector<16x64xf32> -> vector<16x64xf32>
    %c0_5 = arith.constant 0 : index
    %c0_6 = arith.constant 0 : index
    %5 = vector.load %arg4[%c0_5, %c0_6] : memref<1x64xf32, #tpu.memory_space<vmem>>, vector<1x64xf32>
    %6 = vector.broadcast %5 : vector<1x64xf32> to vector<16x64xf32>
    %7 = arith.addf %4, %6 : vector<16x64xf32>
    %cst_7 = arith.constant 0.000000e+00 : f32
    %8 = vector.broadcast %cst_7 : f32 to vector<16x64xf32>
    %9 = arith.maximumf %7, %8 : vector<16x64xf32>
    %10 = arith.truncf %9 : vector<16x64xf32> to vector<16x64xbf16>
    %c0_8 = arith.constant 0 : index
    %c0_9 = arith.constant 0 : index
    %11 = vector.load %arg5[%c0_8, %c0_9] : memref<64x32xbf16, #tpu.memory_space<vmem>>, vector<64x32xbf16>
    %cst_10 = arith.constant dense<0.000000e+00> : vector<16x32xf32>
    %12 = tpu.matmul %10, %11, %cst_10 {dimension_numbers = #tpu.dot_dimension_numbers<[1], [0], [0], [1], [0, 0, 1, 1], [], []>} : vector<16x64xbf16>, vector<64x32xbf16>, vector<16x32xf32> -> vector<16x32xf32>
    %c0_11 = arith.constant 0 : index
    %c0_12 = arith.constant 0 : index
    %13 = vector.load %arg6[%c0_11, %c0_12] : memref<1x32xf32, #tpu.memory_space<vmem>>, vector<1x32xf32>
    %14 = vector.broadcast %13 : vector<1x32xf32> to vector<16x32xf32>
    %15 = arith.addf %12, %14 : vector<16x32xf32>
    %cst_13 = arith.constant 0.000000e+00 : f32
    %16 = vector.broadcast %cst_13 : f32 to vector<16x32xf32>
    %17 = arith.maximumf %15, %16 : vector<16x32xf32>
    %18 = vector.extract_strided_slice %17 {offsets = [0, 0], sizes = [8, 32], strides = [1, 1]} : vector<16x32xf32> to vector<8x32xf32>
    %19 = vector.extract_strided_slice %17 {offsets = [8, 0], sizes = [8, 32], strides = [1, 1]} : vector<16x32xf32> to vector<8x32xf32>
    %20 = arith.mulf %18, %18 : vector<8x32xf32>
    %cst_14 = arith.constant dense<0.000000e+00> : vector<8xf32>
    %21 = vector.multi_reduction <add>, %20, %cst_14 [1] : vector<8x32xf32> to vector<8xf32>
    %22 = vector.shape_cast %21 : vector<8xf32> to vector<8x1xf32>
    %23 = arith.mulf %19, %19 : vector<8x32xf32>
    %cst_15 = arith.constant dense<0.000000e+00> : vector<8xf32>
    %24 = vector.multi_reduction <add>, %23, %cst_15 [1] : vector<8x32xf32> to vector<8xf32>
    %25 = vector.shape_cast %24 : vector<8xf32> to vector<8x1xf32>
    %26 = arith.mulf %18, %19 : vector<8x32xf32>
    %cst_16 = arith.constant dense<0.000000e+00> : vector<8xf32>
    %27 = vector.multi_reduction <add>, %26, %cst_16 [1] : vector<8x32xf32> to vector<8xf32>
    %28 = vector.shape_cast %27 : vector<8xf32> to vector<8x1xf32>
    %29 = math.sqrt %22 : vector<8x1xf32>
    %cst_17 = arith.constant 1.000000e-07 : f32
    %30 = vector.broadcast %cst_17 : f32 to vector<8x1xf32>
    %31 = arith.addf %29, %30 : vector<8x1xf32>
    %32 = math.sqrt %25 : vector<8x1xf32>
    %cst_18 = arith.constant 1.000000e-07 : f32
    %33 = vector.broadcast %cst_18 : f32 to vector<8x1xf32>
    %34 = arith.addf %32, %33 : vector<8x1xf32>
    %35 = arith.mulf %31, %34 : vector<8x1xf32>
    %36 = arith.divf %28, %35 : vector<8x1xf32>
    %37 = arith.negf %36 : vector<8x1xf32>
    %38 = math.exp %37 : vector<8x1xf32>
    %cst_19 = arith.constant 1.000000e+00 : f32
    %39 = vector.broadcast %cst_19 : f32 to vector<8x1xf32>
    %40 = arith.addf %39, %38 : vector<8x1xf32>
    %41 = arith.divf %39, %40 : vector<8x1xf32>
    %42 = vector.shape_cast %41 : vector<8x1xf32> to vector<8x1xf32>
    %43 = vector.broadcast %42 : vector<8x1xf32> to vector<8x128xf32>
    %c0_20 = arith.constant 0 : index
    %c0_21 = arith.constant 0 : index
    %44 = vector.load %arg7[%c0_20, %c0_21] : memref<8x128xf32, #tpu.memory_space<vmem>>, vector<8x128xf32>
    tpu.vector_store %arg7[%c0_20, %c0_21], %43 {strides = array<i32>} : memref<8x128xf32, #tpu.memory_space<vmem>>, vector<8x128xf32>,
    return
  }
  func.func @transform_0(%arg0: i32) -> (i32, i32) {
    %c0_i32 = arith.constant 0 : i32
    %c0_i32_0 = arith.constant 0 : i32
    return %arg0, %c0_i32 : i32, i32
  }
  func.func @transform_1(%arg0: i32) -> (i32, i32) {
    %c0_i32 = arith.constant 0 : i32
    %c0_i32_0 = arith.constant 0 : i32
    return %arg0, %c0_i32 : i32, i32
  }
  func.func @transform_2(%arg0: i32) -> (i32, i32) {
    %c0_i32 = arith.constant 0 : i32
    %c0_i32_0 = arith.constant 0 : i32
    %c0_i32_1 = arith.constant 0 : i32
    return %c0_i32, %c0_i32_0 : i32, i32
  }
  func.func @transform_3(%arg0: i32) -> (i32, i32) {
    %c0_i32 = arith.constant 0 : i32
    %c0_i32_0 = arith.constant 0 : i32
    %c0_i32_1 = arith.constant 0 : i32
    return %c0_i32, %c0_i32_0 : i32, i32
  }
  func.func @transform_4(%arg0: i32) -> (i32, i32) {
    %c0_i32 = arith.constant 0 : i32
    %c0_i32_0 = arith.constant 0 : i32
    %c0_i32_1 = arith.constant 0 : i32
    return %c0_i32, %c0_i32_0 : i32, i32
  }
  func.func @transform_5(%arg0: i32) -> (i32, i32) {
    %c0_i32 = arith.constant 0 : i32
    %c0_i32_0 = arith.constant 0 : i32
    %c0_i32_1 = arith.constant 0 : i32
    return %c0_i32, %c0_i32_0 : i32, i32
  }
  func.func @transform_6(%arg0: i32) -> (i32, i32) {
    %c0_i32 = arith.constant 0 : i32
    %c0_i32_0 = arith.constant 0 : i32
    return %arg0, %c0_i32 : i32, i32
  }
}

</mosaic_0001>

<bundles_post_ra>
// kernel: tpu_custom_call.1
= control target key start
LH: loop header
LB: loop body
LE: loop exit
PB: predicated region body
PF: predicated region fallthrough
CT: control target
= control target key end

     0   :  { %v326_v1 = vmov 0.0   ;;  %vm327_vm0 = vmmov 0   ;;  %vm30_vm1 = vcmask 1043456   ;;  %vm57_vm2 = vcmask 261120   ;;  %s410_s0 = inlined_call_operand.vmem [shape: bf16[8,32], index: 0, kind: input, shape index: {}]   ;;  %s411_s1 = inlined_call_operand.vmem [shape: bf16[8,32], index: 1, kind: input, shape index: {}]   ;;  %s412_s2 = inlined_call_operand.vmem [shape: bf16[32,64], index: 2, kind: input, shape index: {}]   ;;  %s413_s3 = inlined_call_operand.vmem [shape: f32[1,64], index: 3, kind: input, shape index: {}]   ;;  %s414_s4 = inlined_call_operand.vmem [shape: bf16[64,32], index: 4, kind: input, shape index: {}]   ;;  %s415_s5 = inlined_call_operand.vmem [shape: f32[1,32], index: 5, kind: input, shape index: {}]   ;;  %s416_s6 = inlined_call_operand.hbm [shape: f32[8,128], index: 6, kind: output, shape index: {}]  }
   0x1   :  { %v285_v0 = vld [vmem:[%s412_s2] sm:$0xff]   ;;  %262 = vmatprep.subr.bf16.mxu0 %v326_v1  ;;  %v286_v2 = vld [vmem:[%s412_s2 + $0x8] sm:$0xff]   ;;  %270 = vmatprep.subr.bf16.mxu1 %v326_v1 }
   0x2   :  { %263 = vmatpush3.bf16.msra.mxu0 %v285_v0  ;;  %266 = vmatprep.mubr.msk.bf16.mxu0 %vm327_vm0, %v326_v1  ;;  %v25_v3 = vld [vmem:[%s410_s0] sm:$0xf]  ;;  %v289_v6 = vld [vmem:[%s414_s4 + $0x8] sm:$0xff]  }
   0x3   :  { %v287_v4 = vld [vmem:[%s411_s1] ss:$0 sps:$4 sm:$0xff]   ;;  %264 = vmatprep.subr.bf16.mxu0 %v326_v1  ;;  %278 = vmatprep.mubr.msk.bf16.mxu1 %vm327_vm0, %v326_v1 }
   0x4   :  { %v288_v5 = vld [vmem:[%s414_s4] sm:$0xff]   ;;  %v33_v7 = vsel %vm30_vm1, %v25_v3, %v287_v4 }
   0x5   :  { %271 = vmatpush3.bf16.msra.mxu1 %v288_v5 }
   0x6   :  { %265 = vmatpush3.bf16.msra.mxu0 %v286_v2  ;;  %272 = vmatprep.subr.bf16.mxu1 %v326_v1 }
   0x7   :  { %11 = vsyncpa [#allocation3], 0  ;;  %v290_v8 = vld [vmem:[%s414_s4 + $0x10] sm:$0xff]   ;;  %v291_v9 = vld [vmem:[%s414_s4 + $0x18] sm:$0xff]   ;;  %vm143_vm3 = vcmask 523264  }
   0x8   :  { %v243_v10 = vld [vmem:[%s413_s3] ss:$0 sm:$0xff]  ;;  %s328_s3 = smov [#allocation2]  }
   0x9   :  { %267 = vmatmul.mubr.msk.bf16.vlgmr.msra.gmra.mrb[0].mxu0 %vm57_vm2, %v33_v7  ;;  %273 = vmatpush3.bf16.msra.mxu1 %v289_v6  ;;  %v247_v20 = vld [vmem:[%s415_s5] ss:$0 sm:$0xff]  ;;  %s234_s4 = sshll.u32 %s328_s3, 4  ;;  %s235_s4 = int_to_ptr.vmem [resolvable:$true] %s234_s4 }
   0xa   :  { %274 = vmatprep.subr.bf16.mxu1 %v326_v1  ;;  %s302_s5 = scalar_lea.vmem %s235_s4, 128  ;;  %p307_p1 = scmp.lt.s32.totalorder %s235_s4, %s235_s4 }
   0xb   :  { %p303_p0 = scmp.ne.s32.totalorder %s235_s4, %s302_s5  ;;  %p308_p2 = scmp.lt.s32.totalorder %s302_s5, %s302_s5 }
   0xd   :  { %275 = vmatpush3.bf16.msra.mxu1 %v290_v8  ;;  %p309_p3 = por %p308_p2, %p307_p1 }
   0xe   :  { %276 = vmatprep.subr.bf16.mxu1 %v326_v1 }
   0xf   :  { %p310_p4 = pnand %p309_p3, %p303_p0 }
  0x11   :  { %277 = vmatpush3.bf16.msra.mxu1 %v291_v9 }
  0xdc   :  { %v94_v11 = vpop.f32.mrb[0].mxu0 }
  0xdd   :  { %v95_v12 = vadd.f32 %v243_v10, %v94_v11  ;;  %v268_v13 = vpop.f32.mrb[1].mxu0 }
  0xde   :  { %v97_v14 = vpop.f32.mrb[2].mxu0 }
  0xdf   :  { %v98_v15 = vadd.f32 %v243_v10, %v97_v14  ;;  %v269_v16 = vpop.f32.mrb[3].mxu0  ;;  %v101_v17 = vmax.f32 %v95_v12, 0.0 }
  0xe1   :  { %v102_v18 = vmax.f32 %v98_v15, 0.0 }
  0xe3   :  { %v103_v19 = vpack.c.bf16 %v102_v18, %v101_v17 }
  0xe5   :  { %279 = vmatmul.mubr.msk.bf16.vlgmr.msra.gmra.mrb[0].mxu1 %vm143_vm3, %v103_v19 }
 0x1b8   :  { %v181_v21 = vpop.f32.mrb[0].mxu1 }
 0x1b9   :  { %v182_v22 = vadd.f32 %v247_v20, %v181_v21  ;;  %v280_v23 = vpop.f32.mrb[1].mxu1 }
 0x1ba   :  { %v184_v24 = vpop.f32.mrb[2].mxu1 }
 0x1bb   :  { %v188_v25 = vmax.f32 %v182_v22, 0.0  ;;  %v185_v26 = vadd.f32 %v247_v20, %v184_v24  ;;  %v281_v27 = vpop.f32.mrb[3].mxu1 }
 0x1bd   :  { %v189_v28 = vmax.f32 %v185_v26, 0.0  ;;  %v190_v29 = vmul.f32 %v188_v25, %v188_v25 }
 0x1bf   :  { %v191_v30 = vsel %vm57_vm2, %v190_v29, 0.0  ;;  %v198_v31 = vmul.f32 %v189_v28, %v188_v25  ;;  %v194_v32 = vmul.f32 %v189_v28, %v189_v28 }
 0x1c0   :  { %192 = vadd.xlane.f32.xlu0 %v191_v30 }
 0x1c1   :  { %v199_v33 = vsel %vm57_vm2, %v198_v31, 0.0  ;;  %v195_v34 = vsel %vm57_vm2, %v194_v32, 0.0 }
 0x1c2   :  { %200 = vadd.xlane.f32.xlu1 %v199_v33 }
 0x1c4   :  { %196 = vadd.xlane.f32.xlu0 %v195_v34 }
 0x24d   :  { %v193_v35 = vpop.xlane.xlu0 %192 }
 0x24e   :  { %292 = vrsqrt.f32 %v193_v35  ;;  %vm204_vm4 = vcmp.eq.f32.partialorder %v193_v35, inf  ;;  %v207_v41 = vand.u32 2147483648, %v193_v35  ;;  %vm206_vm5 = vcmp.eq.f32.partialorder %v193_v35, 0.0 }
 0x24f   :  { %v201_v51 = vpop.xlane.xlu1 %200 }
 0x251   :  { %v197_v36 = vpop.xlane.xlu0 %196 }
 0x252   :  { %294 = vrsqrt.f32 %v197_v36  ;;  %vm212_vm6 = vcmp.eq.f32.partialorder %v197_v36, inf  ;;  %v215_v44 = vand.u32 2147483648, %v197_v36  ;;  %vm214_vm7 = vcmp.eq.f32.partialorder %v197_v36, 0.0 }
 0x258   :  { %v293_v37 = vpop.eup %292 }
 0x259   :  { %v203_v38 = vmul.f32 %v293_v37, %v193_v35 }
 0x25b   :  { %v205_v39 = vsel %vm204_vm4, %v193_v35, %v203_v38 }
 0x25c   :  { %v295_v40 = vpop.eup %294  ;;  %v208_v43 = vsel %vm206_vm5, %v207_v41, %v205_v39 }
 0x25d   :  { %v211_v42 = vmul.f32 %v295_v40, %v197_v36  ;;  %v209_v47 = vadd.f32 1e-07, %v208_v43 }
 0x25f   :  { %v213_v45 = vsel %vm212_vm6, %v197_v36, %v211_v42 }
 0x260   :  { %v216_v46 = vsel %vm214_vm7, %v215_v44, %v213_v45 }
 0x261   :  { %v217_v48 = vadd.f32 1e-07, %v216_v46 }
 0x263   :  { %v218_v49 = vmul.f32 %v217_v48, %v209_v47 }
 0x265   :  { %296 = vrcp.f32 %v218_v49 }
 0x26f   :  { %v297_v50 = vpop.eup %296 }
 0x270   :  { %v220_v52 = vmul.f32 %v297_v50, %v201_v51 }
 0x272   :  { %v253_v53 = vmul.f32 -1.442695, %v220_v52 }
 0x274   :  { %298 = vpow2.f32 %v253_v53 }
 0x27e   :  { %v299_v54 = vpop.eup %298 }
 0x27f   :  { %v224_v55 = vadd.f32 1.0, %v299_v54 }
 0x281   :  { %300 = vrcp.f32 %v224_v55 }
 0x28b   :  { %v301_v56 = vpop.eup %300 }
 0x28c   :  { %227 = vst [vmem:[#allocation2] sm:$0xff] %v301_v56 }
 0x28d   :  { %313 = shalt.err (!%p310_p4)
}
 0x28e   :  { %s314_s16 = scalar_lea.hbm %s416_s6, 128 }
 0x28f   :  { %p315_p5 = scmp.ne.s32.totalorder %s416_s6, %s314_s16  ;;  %p318_p6 = scmp.lt.u32.totalorder %s314_s16, %s416_s6 }
 0x291   :  { %p320_p7 = pnand %p318_p6, %p315_p5 }
 0x293   :  { %323 = shalt.err (!%p320_p7)
}
 0x294   :  { %237 = dma.vmem_to_hbm [thread:$0]  %s235_s4, 128, %s416_s6, [#allocation3]  }
 0x295   :  { %324 = dma.done.wait [#allocation3], 128  }
 0x296   :  { %325 = vsyncadd [#allocation3], 4294967168 }
 0x297   :  { %241 = vsyncpa [#allocation3], 1 }

</bundles_post_ra>
